<compile_context>
chip_gen: v5e
topology: v5e:2x2
jax: 0.10.0
libtpu: 0.0.40
codegen_flags: <defaults>
</compile_context>

<pallas_src>
import functools

import jax
import jax.numpy as jnp
from jax.experimental import pallas as pl
from jax.experimental.pallas import tpu as pltpu


def _packed_cdist_kernel(x_ref, w_ref, s_ref, csq_ref, o_ref, *, apply_sqrt):
    """One tile of packed rows against all centers, fully lane-dense.

    x_ref:   (TMP, P*D)   f32      P points packed per row
    w_ref:   (P*D, P*KL)  f32/bf16 block-diag of P copies of (-2*C^T), const
    s_ref:   (P*D, P*KL)  f32      block-diag 0/1 segment-sum matrix,  const
    csq_ref: (1,   P*KL)  f32      tiled ||c||^2,                      const
    o_ref:   (TMP, P*KL)  f32      packed distances (lane-dense stores)
    """
    xf = x_ref[...]                                        # (TMP, P*D) f32
    # Cross term (-2 * x.c) on the MXU; optional bf16 cast happens here,
    # in-kernel, so HBM traffic is unchanged while MXU pushes drop.
    xc = jnp.dot(xf.astype(w_ref.dtype), w_ref[...],
                 preferred_element_type=jnp.float32)       # (TMP, P*KL)
    # ||x||^2 also via the MXU (lane-dense): each point's norm lands on its
    # own KL output lanes.  Always f32 (norms/epilogue stay f32).
    xsq = jnp.dot(xf * xf, s_ref[...],
                  preferred_element_type=jnp.float32)      # (TMP, P*KL)
    d2 = jnp.maximum(xsq + xc + csq_ref[...], 0.0)
    o_ref[...] = jnp.sqrt(d2) if apply_sqrt else d2


def _vmem_capacity_bytes():
    try:
        return int(pltpu.get_tpu_info().vmem_capacity_bytes)
    except Exception:  # interpret mode / older runtimes: assume smallest (v7x)
        return 64 * 1024 * 1024


def _lane_pad(width):
    return ((width + 127) // 128) * 128


def _choose_tile(m_rows, max_tile):
    """Packed-row tile: sublane multiple of 8 (or full), <= max_tile, and when
    there is enough work, >= 4 grid steps with an even count so the 'parallel'
    axis shards evenly across v7x's two TensorCores.  No effect on v5e/v6e
    beyond keeping blocks around the ~1 MiB sweet spot."""
    max_tile = max(1, min(max_tile, m_rows))
    if m_rows <= 8:
        return m_rows
    tile = max(8, (max_tile // 8) * 8)
    if m_rows >= 32:
        steps = pl.cdiv(m_rows, tile)
        target = max(4, steps)
        if target % 2:
            target += 1
        cand = ((pl.cdiv(m_rows, target) + 7) // 8) * 8
        if 8 <= cand <= tile:
            tile = cand
    return tile


@functools.partial(
    jax.jit,
    static_argnames=("tile_rows", "vmem_budget_bytes", "use_bf16_matmul",
                     "squared"),
)
def kmeans_forward(x, centers, *, tile_rows=8192,
                   vmem_budget_bytes=12 * 1024 * 1024,
                   use_bf16_matmul=False, squared=False):
    """Pairwise L2 distances between x (N, D) and centers (K, D).

    Equivalent to torch.cdist(X.unsqueeze(0), C.unsqueeze(0), p=2).squeeze(0)
    (or its square when squared=True, monotone-equivalent for argmin/predict).
    """
    x = x.astype(jnp.float32)
    centers = centers.astype(jnp.float32)
    n, d = x.shape
    k, d_c = centers.shape
    assert d == d_c, (d, d_c)
    assert k <= 128, k

    # ---- lane-dense packing geometry --------------------------------------
    # Each point owns KL = next_pow2(K) output lanes; P = 128 // KL points are
    # packed per row so one packed output row is exactly one 128-lane vreg row.
    kl = max(1, pl.next_power_of_2(k))
    p_pack = 128 // kl
    lanes = p_pack * kl                                   # == 128

    n_pad = pl.cdiv(n, p_pack) * p_pack
    if n_pad != n:
        # Zero-pad the ragged tail (< P rows): padded rows give finite
        # distances (sqrt(||c||^2)) and are sliced off below.  Only costs a
        # copy of X when N is not already a multiple of P.
        x = jnp.pad(x, ((0, n_pad - n), (0, 0)))
    m_rows = n_pad // p_pack
    x_packed = x.reshape(m_rows, p_pack * d)              # free contiguous view

    # ---- grid-invariant center-side work (tiny: ~P*D*128 f32, done once) --
    in_dtype = jnp.bfloat16 if use_bf16_matmul else jnp.float32
    ct_pad = jnp.zeros((d, kl), jnp.float32).at[:, :k].set(-2.0 * centers.T)
    eye_p = jnp.eye(p_pack, dtype=jnp.float32)
    w = jnp.kron(eye_p, ct_pad).astype(in_dtype)          # (P*D, 128)
    s = jnp.kron(eye_p, jnp.ones((d, kl), jnp.float32))   # (P*D, 128)
    csq = jnp.zeros((1, kl), jnp.float32).at[:, :k].set(
        jnp.sum(centers * centers, axis=1)[None, :])
    csq = jnp.tile(csq, (1, p_pack))                      # (1, 128)

    # ---- tile size: correctly lane-padded VMEM accounting ------------------
    x_row_bytes = _lane_pad(p_pack * d) * 4               # X stays f32 in HBM
    o_row_bytes = _lane_pad(lanes) * 4
    bytes_per_packed_row = 2 * (x_row_bytes + o_row_bytes)  # double-buffered
    cap = _vmem_capacity_bytes()
    block_budget = min(int(vmem_budget_bytes), int(0.35 * cap))
    max_tile = max(8, block_budget // bytes_per_packed_row)
    pref_tile = max(8, tile_rows // p_pack)               # ~8192 raw rows
    tile_mp = _choose_tile(m_rows, min(max_tile, pref_tile))
    grid = (pl.cdiv(m_rows, tile_mp),)

    const_bytes = (w.size * w.dtype.itemsize + s.size * 4 + lanes * 4)
    needed = bytes_per_packed_row * tile_mp + const_bytes + (2 << 20)
    vmem_limit = int(min(max(needed, 16 * 1024 * 1024), int(0.6 * cap)))
    vmem_limit = max(vmem_limit, int(needed))

    kernel = functools.partial(_packed_cdist_kernel, apply_sqrt=not squared)
    out_packed = pl.pallas_call(
        kernel,
        out_shape=jax.ShapeDtypeStruct((m_rows, lanes), jnp.float32),
        grid_spec=pltpu.PrefetchScalarGridSpec(
            num_scalar_prefetch=0,
            grid=grid,
            in_specs=[
                pl.BlockSpec((tile_mp, p_pack * d), lambda i: (i, 0)),  # X
                pl.BlockSpec((p_pack * d, lanes), lambda i: (0, 0)),    # W
                pl.BlockSpec((p_pack * d, lanes), lambda i: (0, 0)),    # S
                pl.BlockSpec((1, lanes), lambda i: (0, 0)),             # csq
            ],
            out_specs=pl.BlockSpec((tile_mp, lanes), lambda i: (i, 0)),
        ),
        compiler_params=pltpu.CompilerParams(
            dimension_semantics=("parallel",),
            vmem_limit_bytes=vmem_limit,
        ),
    )(x_packed, w, s, csq)

    # (M, P*KL) -> (N_pad, KL) is again a free contiguous reshape.
    return out_packed.reshape(n_pad, kl)[:n, :k]


if __name__ == "__main__":
    # Small deterministic setup consistent with the module: n_clusters=8
    # (default), D=32; N values exercise both the ragged (pad) path and a
    # clean multi-step grid.
    n_clusters = 8
    dim = 32

    key = jax.random.PRNGKey(0)
    key, kc = jax.random.split(key)
    C = jax.random.normal(kc, (n_clusters, dim), dtype=jnp.float32)

    for n_points in (200, 1024):
        key, kx = jax.random.split(key)
        X = jax.random.normal(kx, (n_points, dim), dtype=jnp.float32)

        ref = jnp.sqrt(
            jnp.maximum(
                jnp.sum((X[:, None, :] - C[None, :, :]) ** 2, axis=-1), 0.0))

        # Default f32 path (torch.cdist semantics).
        dists = kmeans_forward(X, C)
        jax.block_until_ready(dists)
        assert dists.shape == (n_points, n_clusters), dists.shape
        err = float(jnp.max(jnp.abs(dists - ref)))
        assert err < 5e-3, f"f32 path: max abs error {err} at N={n_points}"

        # Optional bf16-matmul-operand path (looser tolerance by construction).
        dists_b = kmeans_forward(X, C, use_bf16_matmul=True)
        jax.block_until_ready(dists_b)
        rel = float(jnp.max(jnp.abs(dists_b - ref) / jnp.maximum(ref, 1.0)))
        assert rel < 5e-2, f"bf16 path: max rel error {rel} at N={n_points}"

    # Non-power-of-two cluster count exercises the padded-lane path.
    k2 = 5
    key, kc2, kx2 = jax.random.split(key, 3)
    C2 = jax.random.normal(kc2, (k2, dim), dtype=jnp.float32)
    X2 = jax.random.normal(kx2, (96, dim), dtype=jnp.float32)
    ref2 = jnp.sqrt(jnp.sum((X2[:, None, :] - C2[None, :, :]) ** 2, axis=-1))
    d2 = kmeans_forward(X2, C2)
    jax.block_until_ready(d2)
    assert d2.shape == (96, k2), d2.shape
    err2 = float(jnp.max(jnp.abs(d2 - ref2)))
    assert err2 < 5e-3, f"k={k2} path: max abs error {err2}"

    print("KERNEL_OK")
</pallas_src>

<mosaic_0001>
module attributes {stable_mosaic.version = 11 : i64} {
  func.func @_packed_cdist_kernel(%arg0: i32, %arg1: memref<8x512xf32, #tpu.memory_space<vmem>>, %arg2: memref<512x128xf32, #tpu.memory_space<vmem>>, %arg3: memref<512x128xf32, #tpu.memory_space<vmem>>, %arg4: memref<1x128xf32, #tpu.memory_space<vmem>>, %arg5: memref<8x128xf32, #tpu.memory_space<vmem>>) attributes {dimension_semantics = [#tpu.dimension_semantics<parallel>], iteration_bounds = array<i64: 2>, scalar_prefetch = 0 : i64, scratch_operands = 0 : i64, tpu.core_type = #tpu.core_type<tc>, window_params = [{transform_indices = @transform_0, window_bounds = array<i64: 8, 512>}, {pipeline_mode = #tpu.pipeline_mode<synchronous>, transform_indices = @transform_1, window_bounds = array<i64: 512, 128>}, {pipeline_mode = #tpu.pipeline_mode<synchronous>, transform_indices = @transform_2, window_bounds = array<i64: 512, 128>}, {pipeline_mode = #tpu.pipeline_mode<synchronous>, transform_indices = @transform_3, window_bounds = array<i64: 1, 128>}, {transform_indices = @transform_4, window_bounds = array<i64: 8, 128>}]} {
    %c0 = arith.constant 0 : index
    %c0_0 = arith.constant 0 : index
    %0 = vector.load %arg1[%c0, %c0_0] : memref<8x512xf32, #tpu.memory_space<vmem>>, vector<8x512xf32>
    %c0_1 = arith.constant 0 : index
    %c0_2 = arith.constant 0 : index
    %1 = vector.load %arg2[%c0_1, %c0_2] : memref<512x128xf32, #tpu.memory_space<vmem>>, vector<512x128xf32>
    %cst = arith.constant dense<0.000000e+00> : vector<8x128xf32>
    %2 = tpu.matmul %0, %1, %cst {dimension_numbers = #tpu.dot_dimension_numbers<[1], [0], [0], [1], [0, 0, 1, 1], [], []>} : vector<8x512xf32>, vector<512x128xf32>, vector<8x128xf32> -> vector<8x128xf32>
    %3 = arith.mulf %0, %0 : vector<8x512xf32>
    %c0_3 = arith.constant 0 : index
    %c0_4 = arith.constant 0 : index
    %4 = vector.load %arg3[%c0_3, %c0_4] : memref<512x128xf32, #tpu.memory_space<vmem>>, vector<512x128xf32>
    %cst_5 = arith.constant dense<0.000000e+00> : vector<8x128xf32>
    %5 = tpu.matmul %3, %4, %cst_5 {dimension_numbers = #tpu.dot_dimension_numbers<[1], [0], [0], [1], [0, 0, 1, 1], [], []>} : vector<8x512xf32>, vector<512x128xf32>, vector<8x128xf32> -> vector<8x128xf32>
    %6 = arith.addf %5, %2 : vector<8x128xf32>
    %c0_6 = arith.constant 0 : index
    %c0_7 = arith.constant 0 : index
    %7 = vector.load %arg4[%c0_6, %c0_7] : memref<1x128xf32, #tpu.memory_space<vmem>>, vector<1x128xf32>
    %8 = vector.broadcast %7 : vector<1x128xf32> to vector<8x128xf32>
    %9 = arith.addf %6, %8 : vector<8x128xf32>
    %cst_8 = arith.constant 0.000000e+00 : f32
    %10 = vector.broadcast %cst_8 : f32 to vector<8x128xf32>
    %11 = arith.maximumf %9, %10 : vector<8x128xf32>
    %12 = math.sqrt %11 : vector<8x128xf32>
    %c0_9 = arith.constant 0 : index
    %c0_10 = arith.constant 0 : index
    %13 = vector.load %arg5[%c0_9, %c0_10] : memref<8x128xf32, #tpu.memory_space<vmem>>, vector<8x128xf32>
    tpu.vector_store %arg5[%c0_9, %c0_10], %12 {strides = array<i32>} : memref<8x128xf32, #tpu.memory_space<vmem>>, vector<8x128xf32>,
    return
  }
  func.func @transform_0(%arg0: i32) -> (i32, i32) {
    %c0_i32 = arith.constant 0 : i32
    %c0_i32_0 = arith.constant 0 : i32
    return %arg0, %c0_i32 : i32, i32
  }
  func.func @transform_1(%arg0: i32) -> (i32, i32) {
    %c0_i32 = arith.constant 0 : i32
    %c0_i32_0 = arith.constant 0 : i32
    %c0_i32_1 = arith.constant 0 : i32
    return %c0_i32, %c0_i32_0 : i32, i32
  }
  func.func @transform_2(%arg0: i32) -> (i32, i32) {
    %c0_i32 = arith.constant 0 : i32
    %c0_i32_0 = arith.constant 0 : i32
    %c0_i32_1 = arith.constant 0 : i32
    return %c0_i32, %c0_i32_0 : i32, i32
  }
  func.func @transform_3(%arg0: i32) -> (i32, i32) {
    %c0_i32 = arith.constant 0 : i32
    %c0_i32_0 = arith.constant 0 : i32
    %c0_i32_1 = arith.constant 0 : i32
    return %c0_i32, %c0_i32_0 : i32, i32
  }
  func.func @transform_4(%arg0: i32) -> (i32, i32) {
    %c0_i32 = arith.constant 0 : i32
    %c0_i32_0 = arith.constant 0 : i32
    return %arg0, %c0_i32 : i32, i32
  }
}

</mosaic_0001>

<bundles_post_ra>
// kernel: mul.24
= control target key start
LH: loop header
LB: loop body
LE: loop exit
PB: predicated region body
PF: predicated region fallthrough
CT: control target
= control target key end

     0   :  { %s1477_s0 = inlined_call_operand.vmem [shape: f32[512,128], index: 0, kind: input, shape index: {}]   ;;  %s1478_s1 = inlined_call_operand.vmem [shape: f32[512,128], index: 1, kind: input, shape index: {}]   ;;  %s1479_s2 = inlined_call_operand.vmem [shape: f32[512,128], index: 2, kind: output, shape index: {}]  }
   0x1   :  { %v3_v0 = vld [vmem:[%s1477_s0] sm:$0xff]  ;;  %v640_v2 = vld [vmem:[%s1477_s0 + $0x8] sm:$0xff]  ;;  %v643_v5 = vld [vmem:[%s1477_s0 + $0x10] sm:$0xff] }
   0x2   :  { %v4_v1 = vld [vmem:[%s1478_s1] sm:$0xff]  ;;  %v641_v4 = vld [vmem:[%s1478_s1 + $0x8] sm:$0xff]  ;;  %v644_v6 = vld [vmem:[%s1478_s1 + $0x10] sm:$0xff] }
   0x3   :  { %v7_v3 = vmul.f32 %v4_v1, %v3_v0  ;;  %v16_v7 = vmul.f32 %v641_v4, %v640_v2  ;;  %v26_v8 = vmul.f32 %v644_v6, %v643_v5  ;;  %v646_v9 = vld [vmem:[%s1477_s0 + $0x18] sm:$0xff]  ;;  %v649_v11 = vld [vmem:[%s1477_s0 + $0x20] sm:$0xff]  ;;  %v652_v14 = vld [vmem:[%s1477_s0 + $0x28] sm:$0xff] }
   0x4   :  { %v647_v10 = vld [vmem:[%s1478_s1 + $0x18] sm:$0xff]  ;;  %v650_v13 = vld [vmem:[%s1478_s1 + $0x20] sm:$0xff]  ;;  %v653_v15 = vld [vmem:[%s1478_s1 + $0x28] sm:$0xff] }
   0x5   :  { %9 = vst [vmem:[%s1479_s2] sm:$0xff] %v7_v3  ;;  %v36_v12 = vmul.f32 %v647_v10, %v646_v9  ;;  %v46_v16 = vmul.f32 %v650_v13, %v649_v11  ;;  %v56_v17 = vmul.f32 %v653_v15, %v652_v14  ;;  %v655_v18 = vld [vmem:[%s1477_s0 + $0x30] sm:$0xff]  ;;  %v658_v20 = vld [vmem:[%s1477_s0 + $0x38] sm:$0xff]  ;;  %v661_v23 = vld [vmem:[%s1477_s0 + $0x40] sm:$0xff] }
   0x6   :  { %642 = vst [vmem:[%s1479_s2 + $0x8] sm:$0xff] %v16_v7  ;;  %v656_v19 = vld [vmem:[%s1478_s1 + $0x30] sm:$0xff]  ;;  %v659_v22 = vld [vmem:[%s1478_s1 + $0x38] sm:$0xff]  ;;  %v662_v24 = vld [vmem:[%s1478_s1 + $0x40] sm:$0xff] }
   0x7   :  { %645 = vst [vmem:[%s1479_s2 + $0x10] sm:$0xff] %v26_v8  ;;  %v66_v21 = vmul.f32 %v656_v19, %v655_v18  ;;  %v76_v25 = vmul.f32 %v659_v22, %v658_v20  ;;  %v86_v26 = vmul.f32 %v662_v24, %v661_v23  ;;  %v664_v27 = vld [vmem:[%s1477_s0 + $0x48] sm:$0xff]  ;;  %v667_v29 = vld [vmem:[%s1477_s0 + $0x50] sm:$0xff]  ;;  %v670_v32 = vld [vmem:[%s1477_s0 + $0x58] sm:$0xff] }
   0x8   :  { %648 = vst [vmem:[%s1479_s2 + $0x18] sm:$0xff] %v36_v12  ;;  %v665_v28 = vld [vmem:[%s1478_s1 + $0x48] sm:$0xff]  ;;  %v668_v31 = vld [vmem:[%s1478_s1 + $0x50] sm:$0xff]  ;;  %v671_v33 = vld [vmem:[%s1478_s1 + $0x58] sm:$0xff] }
   0x9   :  { %651 = vst [vmem:[%s1479_s2 + $0x20] sm:$0xff] %v46_v16  ;;  %v96_v30 = vmul.f32 %v665_v28, %v664_v27  ;;  %v106_v34 = vmul.f32 %v668_v31, %v667_v29  ;;  %v116_v35 = vmul.f32 %v671_v33, %v670_v32  ;;  %v673_v36 = vld [vmem:[%s1477_s0 + $0x60] sm:$0xff]  ;;  %v676_v38 = vld [vmem:[%s1477_s0 + $0x68] sm:$0xff]  ;;  %v679_v41 = vld [vmem:[%s1477_s0 + $0x70] sm:$0xff] }
   0xa   :  { %654 = vst [vmem:[%s1479_s2 + $0x28] sm:$0xff] %v56_v17  ;;  %v674_v37 = vld [vmem:[%s1478_s1 + $0x60] sm:$0xff]  ;;  %v677_v40 = vld [vmem:[%s1478_s1 + $0x68] sm:$0xff]  ;;  %v680_v42 = vld [vmem:[%s1478_s1 + $0x70] sm:$0xff] }
   0xb   :  { %657 = vst [vmem:[%s1479_s2 + $0x30] sm:$0xff] %v66_v21  ;;  %v126_v39 = vmul.f32 %v674_v37, %v673_v36  ;;  %v136_v43 = vmul.f32 %v677_v40, %v676_v38  ;;  %v146_v44 = vmul.f32 %v680_v42, %v679_v41  ;;  %v682_v45 = vld [vmem:[%s1477_s0 + $0x78] sm:$0xff]  ;;  %v685_v47 = vld [vmem:[%s1477_s0 + $0x80] sm:$0xff]  ;;  %v688_v50 = vld [vmem:[%s1477_s0 + $0x88] sm:$0xff] }
   0xc   :  { %660 = vst [vmem:[%s1479_s2 + $0x38] sm:$0xff] %v76_v25  ;;  %v683_v46 = vld [vmem:[%s1478_s1 + $0x78] sm:$0xff]  ;;  %v686_v49 = vld [vmem:[%s1478_s1 + $0x80] sm:$0xff]  ;;  %v689_v51 = vld [vmem:[%s1478_s1 + $0x88] sm:$0xff] }
   0xd   :  { %663 = vst [vmem:[%s1479_s2 + $0x40] sm:$0xff] %v86_v26  ;;  %v156_v48 = vmul.f32 %v683_v46, %v682_v45  ;;  %v166_v52 = vmul.f32 %v686_v49, %v685_v47  ;;  %v176_v53 = vmul.f32 %v689_v51, %v688_v50  ;;  %v691_v54 = vld [vmem:[%s1477_s0 + $0x90] sm:$0xff]  ;;  %v694_v56 = vld [vmem:[%s1477_s0 + $0x98] sm:$0xff]  ;;  %v697_v59 = vld [vmem:[%s1477_s0 + $0xa0] sm:$0xff] }
   0xe   :  { %666 = vst [vmem:[%s1479_s2 + $0x48] sm:$0xff] %v96_v30  ;;  %v692_v55 = vld [vmem:[%s1478_s1 + $0x90] sm:$0xff]  ;;  %v695_v58 = vld [vmem:[%s1478_s1 + $0x98] sm:$0xff]  ;;  %v698_v60 = vld [vmem:[%s1478_s1 + $0xa0] sm:$0xff] }
   0xf   :  { %669 = vst [vmem:[%s1479_s2 + $0x50] sm:$0xff] %v106_v34  ;;  %v186_v57 = vmul.f32 %v692_v55, %v691_v54  ;;  %v196_v61 = vmul.f32 %v695_v58, %v694_v56  ;;  %v206_v62 = vmul.f32 %v698_v60, %v697_v59  ;;  %v700_v63 = vld [vmem:[%s1477_s0 + $0xa8] sm:$0xff]  ;;  %v703_v1 = vld [vmem:[%s1477_s0 + $0xb0] sm:$0xff]  ;;  %v706_v4 = vld [vmem:[%s1477_s0 + $0xb8] sm:$0xff] }
  0x10   :  { %672 = vst [vmem:[%s1479_s2 + $0x58] sm:$0xff] %v116_v35  ;;  %v701_v0 = vld [vmem:[%s1478_s1 + $0xa8] sm:$0xff]  ;;  %v704_v3 = vld [vmem:[%s1478_s1 + $0xb0] sm:$0xff]  ;;  %v707_v5 = vld [vmem:[%s1478_s1 + $0xb8] sm:$0xff] }
  0x11   :  { %675 = vst [vmem:[%s1479_s2 + $0x60] sm:$0xff] %v126_v39  ;;  %v216_v2 = vmul.f32 %v701_v0, %v700_v63  ;;  %v226_v6 = vmul.f32 %v704_v3, %v703_v1  ;;  %v236_v7 = vmul.f32 %v707_v5, %v706_v4  ;;  %v709_v8 = vld [vmem:[%s1477_s0 + $0xc0] sm:$0xff]  ;;  %v712_v10 = vld [vmem:[%s1477_s0 + $0xc8] sm:$0xff]  ;;  %v715_v13 = vld [vmem:[%s1477_s0 + $0xd0] sm:$0xff] }
  0x12   :  { %678 = vst [vmem:[%s1479_s2 + $0x68] sm:$0xff] %v136_v43  ;;  %v710_v9 = vld [vmem:[%s1478_s1 + $0xc0] sm:$0xff]  ;;  %v713_v12 = vld [vmem:[%s1478_s1 + $0xc8] sm:$0xff]  ;;  %v716_v14 = vld [vmem:[%s1478_s1 + $0xd0] sm:$0xff] }
  0x13   :  { %681 = vst [vmem:[%s1479_s2 + $0x70] sm:$0xff] %v146_v44  ;;  %v246_v11 = vmul.f32 %v710_v9, %v709_v8  ;;  %v256_v15 = vmul.f32 %v713_v12, %v712_v10  ;;  %v266_v16 = vmul.f32 %v716_v14, %v715_v13  ;;  %v718_v17 = vld [vmem:[%s1477_s0 + $0xd8] sm:$0xff]  ;;  %v721_v19 = vld [vmem:[%s1477_s0 + $0xe0] sm:$0xff]  ;;  %v724_v22 = vld [vmem:[%s1477_s0 + $0xe8] sm:$0xff] }
  0x14   :  { %684 = vst [vmem:[%s1479_s2 + $0x78] sm:$0xff] %v156_v48  ;;  %v719_v18 = vld [vmem:[%s1478_s1 + $0xd8] sm:$0xff]  ;;  %v722_v21 = vld [vmem:[%s1478_s1 + $0xe0] sm:$0xff]  ;;  %v725_v23 = vld [vmem:[%s1478_s1 + $0xe8] sm:$0xff] }
  0x15   :  { %687 = vst [vmem:[%s1479_s2 + $0x80] sm:$0xff] %v166_v52  ;;  %v276_v20 = vmul.f32 %v719_v18, %v718_v17  ;;  %v286_v24 = vmul.f32 %v722_v21, %v721_v19  ;;  %v1078_v25 = vmul.f32 %v725_v23, %v724_v22  ;;  %v727_v26 = vld [vmem:[%s1477_s0 + $0xf0] sm:$0xff]  ;;  %v730_v28 = vld [vmem:[%s1477_s0 + $0xf8] sm:$0xff]  ;;  %v733_v31 = vld [vmem:[%s1477_s0 + $0x100] sm:$0xff] }
  0x16   :  { %690 = vst [vmem:[%s1479_s2 + $0x88] sm:$0xff] %v176_v53  ;;  %v728_v27 = vld [vmem:[%s1478_s1 + $0xf0] sm:$0xff]  ;;  %v731_v30 = vld [vmem:[%s1478_s1 + $0xf8] sm:$0xff]  ;;  %v734_v32 = vld [vmem:[%s1478_s1 + $0x100] sm:$0xff] }
  0x17   :  { %693 = vst [vmem:[%s1479_s2 + $0x90] sm:$0xff] %v186_v57  ;;  %v1092_v29 = vmul.f32 %v728_v27, %v727_v26  ;;  %v1106_v33 = vmul.f32 %v731_v30, %v730_v28  ;;  %v1108_v34 = vmul.f32 %v734_v32, %v733_v31  ;;  %v736_v35 = vld [vmem:[%s1477_s0 + $0x108] sm:$0xff]  ;;  %v739_v37 = vld [vmem:[%s1477_s0 + $0x110] sm:$0xff]  ;;  %v742_v40 = vld [vmem:[%s1477_s0 + $0x118] sm:$0xff] }
  0x18   :  { %696 = vst [vmem:[%s1479_s2 + $0x98] sm:$0xff] %v196_v61  ;;  %v737_v36 = vld [vmem:[%s1478_s1 + $0x108] sm:$0xff]  ;;  %v740_v39 = vld [vmem:[%s1478_s1 + $0x110] sm:$0xff]  ;;  %v743_v41 = vld [vmem:[%s1478_s1 + $0x118] sm:$0xff] }
  0x19   :  { %699 = vst [vmem:[%s1479_s2 + $0xa0] sm:$0xff] %v206_v62  ;;  %v1122_v38 = vmul.f32 %v737_v36, %v736_v35  ;;  %v1136_v42 = vmul.f32 %v740_v39, %v739_v37  ;;  %v1138_v43 = vmul.f32 %v743_v41, %v742_v40  ;;  %v745_v44 = vld [vmem:[%s1477_s0 + $0x120] sm:$0xff]  ;;  %v748_v46 = vld [vmem:[%s1477_s0 + $0x128] sm:$0xff]  ;;  %v751_v49 = vld [vmem:[%s1477_s0 + $0x130] sm:$0xff] }
  0x1a   :  { %702 = vst [vmem:[%s1479_s2 + $0xa8] sm:$0xff] %v216_v2  ;;  %v746_v45 = vld [vmem:[%s1478_s1 + $0x120] sm:$0xff]  ;;  %v749_v48 = vld [vmem:[%s1478_s1 + $0x128] sm:$0xff]  ;;  %v752_v50 = vld [vmem:[%s1478_s1 + $0x130] sm:$0xff] }
  0x1b   :  { %705 = vst [vmem:[%s1479_s2 + $0xb0] sm:$0xff] %v226_v6  ;;  %v1152_v47 = vmul.f32 %v746_v45, %v745_v44  ;;  %v1166_v51 = vmul.f32 %v749_v48, %v748_v46  ;;  %v1168_v52 = vmul.f32 %v752_v50, %v751_v49  ;;  %v754_v53 = vld [vmem:[%s1477_s0 + $0x138] sm:$0xff]  ;;  %v757_v55 = vld [vmem:[%s1477_s0 + $0x140] sm:$0xff]  ;;  %v760_v58 = vld [vmem:[%s1477_s0 + $0x148] sm:$0xff] }
  0x1c   :  { %708 = vst [vmem:[%s1479_s2 + $0xb8] sm:$0xff] %v236_v7  ;;  %v755_v54 = vld [vmem:[%s1478_s1 + $0x138] sm:$0xff]  ;;  %v758_v57 = vld [vmem:[%s1478_s1 + $0x140] sm:$0xff]  ;;  %v761_v59 = vld [vmem:[%s1478_s1 + $0x148] sm:$0xff] }
  0x1d   :  { %711 = vst [vmem:[%s1479_s2 + $0xc0] sm:$0xff] %v246_v11  ;;  %v1182_v56 = vmul.f32 %v755_v54, %v754_v53  ;;  %v1196_v60 = vmul.f32 %v758_v57, %v757_v55  ;;  %v1198_v61 = vmul.f32 %v761_v59, %v760_v58  ;;  %v763_v62 = vld [vmem:[%s1477_s0 + $0x150] sm:$0xff]  ;;  %v766_v0 = vld [vmem:[%s1477_s0 + $0x158] sm:$0xff]  ;;  %v769_v3 = vld [vmem:[%s1477_s0 + $0x160] sm:$0xff] }
  0x1e   :  { %714 = vst [vmem:[%s1479_s2 + $0xc8] sm:$0xff] %v256_v15  ;;  %v764_v63 = vld [vmem:[%s1478_s1 + $0x150] sm:$0xff]  ;;  %v767_v2 = vld [vmem:[%s1478_s1 + $0x158] sm:$0xff]  ;;  %v770_v4 = vld [vmem:[%s1478_s1 + $0x160] sm:$0xff] }
  0x1f   :  { %717 = vst [vmem:[%s1479_s2 + $0xd0] sm:$0xff] %v266_v16  ;;  %v1212_v1 = vmul.f32 %v764_v63, %v763_v62  ;;  %v1226_v5 = vmul.f32 %v767_v2, %v766_v0  ;;  %v1228_v6 = vmul.f32 %v770_v4, %v769_v3  ;;  %v772_v7 = vld [vmem:[%s1477_s0 + $0x168] sm:$0xff]  ;;  %v775_v9 = vld [vmem:[%s1477_s0 + $0x170] sm:$0xff]  ;;  %v778_v12 = vld [vmem:[%s1477_s0 + $0x178] sm:$0xff] }
  0x20   :  { %720 = vst [vmem:[%s1479_s2 + $0xd8] sm:$0xff] %v276_v20  ;;  %v773_v8 = vld [vmem:[%s1478_s1 + $0x168] sm:$0xff]  ;;  %v776_v11 = vld [vmem:[%s1478_s1 + $0x170] sm:$0xff]  ;;  %v779_v13 = vld [vmem:[%s1478_s1 + $0x178] sm:$0xff] }
  0x21   :  { %723 = vst [vmem:[%s1479_s2 + $0xe0] sm:$0xff] %v286_v24  ;;  %v1242_v10 = vmul.f32 %v773_v8, %v772_v7  ;;  %v1257_v14 = vmul.f32 %v776_v11, %v775_v9  ;;  %v1259_v15 = vmul.f32 %v779_v13, %v778_v12  ;;  %v781_v16 = vld [vmem:[%s1477_s0 + $0x180] sm:$0xff]  ;;  %v784_v18 = vld [vmem:[%s1477_s0 + $0x188] sm:$0xff]  ;;  %v787_v21 = vld [vmem:[%s1477_s0 + $0x190] sm:$0xff] }
  0x22   :  { %726 = vst [vmem:[%s1479_s2 + $0xe8] sm:$0xff] %v1078_v25  ;;  %v782_v17 = vld [vmem:[%s1478_s1 + $0x180] sm:$0xff]  ;;  %v785_v20 = vld [vmem:[%s1478_s1 + $0x188] sm:$0xff]  ;;  %v788_v22 = vld [vmem:[%s1478_s1 + $0x190] sm:$0xff] }
  0x23   :  { %729 = vst [vmem:[%s1479_s2 + $0xf0] sm:$0xff] %v1092_v29  ;;  %v486_v19 = vmul.f32 %v782_v17, %v781_v16  ;;  %v496_v23 = vmul.f32 %v785_v20, %v784_v18  ;;  %v506_v24 = vmul.f32 %v788_v22, %v787_v21  ;;  %v790_v25 = vld [vmem:[%s1477_s0 + $0x198] sm:$0xff]  ;;  %v793_v27 = vld [vmem:[%s1477_s0 + $0x1a0] sm:$0xff]  ;;  %v796_v30 = vld [vmem:[%s1477_s0 + $0x1a8] sm:$0xff] }
  0x24   :  { %732 = vst [vmem:[%s1479_s2 + $0xf8] sm:$0xff] %v1106_v33  ;;  %v791_v26 = vld [vmem:[%s1478_s1 + $0x198] sm:$0xff]  ;;  %v794_v29 = vld [vmem:[%s1478_s1 + $0x1a0] sm:$0xff]  ;;  %v797_v31 = vld [vmem:[%s1478_s1 + $0x1a8] sm:$0xff] }
  0x25   :  { %735 = vst [vmem:[%s1479_s2 + $0x100] sm:$0xff] %v1108_v34  ;;  %v516_v28 = vmul.f32 %v791_v26, %v790_v25  ;;  %v526_v32 = vmul.f32 %v794_v29, %v793_v27  ;;  %v536_v33 = vmul.f32 %v797_v31, %v796_v30  ;;  %v799_v34 = vld [vmem:[%s1477_s0 + $0x1b0] sm:$0xff]  ;;  %v802_v36 = vld [vmem:[%s1477_s0 + $0x1b8] sm:$0xff]  ;;  %v805_v39 = vld [vmem:[%s1477_s0 + $0x1c0] sm:$0xff] }
  0x26   :  { %738 = vst [vmem:[%s1479_s2 + $0x108] sm:$0xff] %v1122_v38  ;;  %v800_v35 = vld [vmem:[%s1478_s1 + $0x1b0] sm:$0xff]  ;;  %v803_v38 = vld [vmem:[%s1478_s1 + $0x1b8] sm:$0xff]  ;;  %v806_v40 = vld [vmem:[%s1478_s1 + $0x1c0] sm:$0xff] }
  0x27   :  { %741 = vst [vmem:[%s1479_s2 + $0x110] sm:$0xff] %v1136_v42  ;;  %v546_v37 = vmul.f32 %v800_v35, %v799_v34  ;;  %v556_v41 = vmul.f32 %v803_v38, %v802_v36  ;;  %v566_v42 = vmul.f32 %v806_v40, %v805_v39  ;;  %v809_v44 = vld [vmem:[%s1478_s1 + $0x1c8] sm:$0xff]  ;;  %v811_v45 = vld [vmem:[%s1477_s0 + $0x1d0] sm:$0xff]  ;;  %v814_v48 = vld [vmem:[%s1477_s0 + $0x1d8] sm:$0xff] }
  0x28   :  { %744 = vst [vmem:[%s1479_s2 + $0x118] sm:$0xff] %v1138_v43  ;;  %v808_v43 = vld [vmem:[%s1477_s0 + $0x1c8] sm:$0xff]  ;;  %v815_v49 = vld [vmem:[%s1478_s1 + $0x1d8] sm:$0xff]  ;;  %v817_v53 = vld [vmem:[%s1477_s0 + $0x1e0] sm:$0xff] }
  0x29   :  { %747 = vst [vmem:[%s1479_s2 + $0x120] sm:$0xff] %v1152_v47  ;;  %v576_v46 = vmul.f32 %v809_v44, %v808_v43  ;;  %v812_v47 = vld [vmem:[%s1478_s1 + $0x1d0] sm:$0xff]  ;;  %v818_v54 = vld [vmem:[%s1478_s1 + $0x1e0] sm:$0xff]  ;;  %v820_v55 = vld [vmem:[%s1477_s0 + $0x1e8] sm:$0xff] }
  0x2a   :  { %750 = vst [vmem:[%s1479_s2 + $0x128] sm:$0xff] %v1166_v51  ;;  %v586_v50 = vmul.f32 %v812_v47, %v811_v45  ;;  %v596_v51 = vmul.f32 %v815_v49, %v814_v48  ;;  %v821_v57 = vld [vmem:[%s1478_s1 + $0x1e8] sm:$0xff]  ;;  %v823_v58 = vld [vmem:[%s1477_s0 + $0x1f0] sm:$0xff]  ;;  %v826_v63 = vld [vmem:[%s1477_s0 + $0x1f8] sm:$0xff] }
  0x2b   :  { %753 = vst [vmem:[%s1479_s2 + $0x130] sm:$0xff] %v1168_v52  ;;  %v606_v52 = vmul.f32 %v818_v54, %v817_v53  ;;  %v824_v59 = vld [vmem:[%s1478_s1 + $0x1f0] sm:$0xff]  ;;  %v827_v0 = vld [vmem:[%s1478_s1 + $0x1f8] sm:$0xff] }
  0x2c   :  { %756 = vst [vmem:[%s1479_s2 + $0x138] sm:$0xff] %v1182_v56  ;;  %v616_v56 = vmul.f32 %v821_v57, %v820_v55  ;;  %v626_v62 = vmul.f32 %v824_v59, %v823_v58 }
  0x2d   :  { %759 = vst [vmem:[%s1479_s2 + $0x140] sm:$0xff] %v1196_v60  ;;  %v636_v60 = vmul.f32 %v827_v0, %v826_v63 }
  0x2e   :  { %762 = vst [vmem:[%s1479_s2 + $0x148] sm:$0xff] %v1198_v61 }
  0x2f   :  { %765 = vst [vmem:[%s1479_s2 + $0x150] sm:$0xff] %v1212_v1 }
  0x30   :  { %768 = vst [vmem:[%s1479_s2 + $0x158] sm:$0xff] %v1226_v5 }
  0x31   :  { %771 = vst [vmem:[%s1479_s2 + $0x160] sm:$0xff] %v1228_v6 }
  0x32   :  { %774 = vst [vmem:[%s1479_s2 + $0x168] sm:$0xff] %v1242_v10 }
  0x33   :  { %777 = vst [vmem:[%s1479_s2 + $0x170] sm:$0xff] %v1257_v14 }
  0x34   :  { %780 = vst [vmem:[%s1479_s2 + $0x178] sm:$0xff] %v1259_v15 }
  0x35   :  { %783 = vst [vmem:[%s1479_s2 + $0x180] sm:$0xff] %v486_v19 }
  0x36   :  { %786 = vst [vmem:[%s1479_s2 + $0x188] sm:$0xff] %v496_v23 }
  0x37   :  { %789 = vst [vmem:[%s1479_s2 + $0x190] sm:$0xff] %v506_v24 }
  0x38   :  { %792 = vst [vmem:[%s1479_s2 + $0x198] sm:$0xff] %v516_v28 }
  0x39   :  { %795 = vst [vmem:[%s1479_s2 + $0x1a0] sm:$0xff] %v526_v32 }
  0x3a   :  { %798 = vst [vmem:[%s1479_s2 + $0x1a8] sm:$0xff] %v536_v33 }
  0x3b   :  { %801 = vst [vmem:[%s1479_s2 + $0x1b0] sm:$0xff] %v546_v37 }
  0x3c   :  { %804 = vst [vmem:[%s1479_s2 + $0x1b8] sm:$0xff] %v556_v41 }
  0x3d   :  { %807 = vst [vmem:[%s1479_s2 + $0x1c0] sm:$0xff] %v566_v42 }
  0x3e   :  { %810 = vst [vmem:[%s1479_s2 + $0x1c8] sm:$0xff] %v576_v46 }
  0x3f   :  { %813 = vst [vmem:[%s1479_s2 + $0x1d0] sm:$0xff] %v586_v50 }
  0x40   :  { %816 = vst [vmem:[%s1479_s2 + $0x1d8] sm:$0xff] %v596_v51 }
  0x41   :  { %819 = vst [vmem:[%s1479_s2 + $0x1e0] sm:$0xff] %v606_v52 }
  0x42   :  { %822 = vst [vmem:[%s1479_s2 + $0x1e8] sm:$0xff] %v616_v56 }
  0x43   :  { %825 = vst [vmem:[%s1479_s2 + $0x1f0] sm:$0xff] %v626_v62 }
  0x44   :  { %828 = vst [vmem:[%s1479_s2 + $0x1f8] sm:$0xff] %v636_v60 }

// kernel: kmeans_forward.1
= control target key start
LH: loop header
LB: loop body
LE: loop exit
PB: predicated region body
PF: predicated region fallthrough
CT: control target
= control target key end

     0   :  { %s619_s15 = smov 0   ;;  %s1043_s0 = inlined_call_operand.vmem [shape: f32[13,512], index: 0, kind: input, shape index: {}]   ;;  %s1044_s1 = inlined_call_operand.vmem [shape: f32[512,128], index: 1, kind: input, shape index: {}]   ;;  %s1045_s2 = inlined_call_operand.vmem [shape: f32[512,128], index: 2, kind: input, shape index: {}]   ;;  %s1046_s3 = inlined_call_operand.vmem [shape: f32[1,128], index: 3, kind: input, shape index: {}]   ;;  %s1047_s4 = inlined_call_operand.vmem [shape: f32[13,128], index: 4, kind: output, shape index: {}]  }
   0x1 LB: > { %s564_s16 = sadd.s32 4294967295, %s592_s15   ;;  %p568_p0 = scmp.ge.s32.totalorder %s592_s15, 1  ;;  %s592_s15 = sphi %s619_s15, %s14_s15  }
   0x2   : > { %p162_p1 = scmp.lt.s32.totalorder %s592_s15, 3 }
   0x4   : > { %p163_p2 = pnand %p568_p0, %p162_p1 }
   0x5   : > { %p869_p3 = scmp.lt.s32.totalorder (!%p163_p2), %s564_s16, 1 }
   0x6   : > { %166 = sbr.rel (%p163_p2) target bundleno = 240 (0xf0), region = 36 }
   0xb   : > { %v215_v0 = vld [vmem:[%s1044_s1 + $0x78] sm:$0xff]  ;;  %v214_v2 = vld [vmem:[%s1044_s1 + $0x70] sm:$0xff]  ;;  %v213_v6 = vld [vmem:[%s1044_s1 + $0x68] sm:$0xff]  ;;  %s1050_s16 = smov (!%p869_p3, %s564_s16), 1 }
   0xc   : > { %v247_v1 = vld [vmem:[%s1044_s1 + $0x178] sm:$0xff]  ;;  %264 = vmatpush.msra.mxu0 %v215_v0  ;;  %v246_v4 = vld [vmem:[%s1044_s1 + $0x170] sm:$0xff]  ;;  %v245_v8 = vld [vmem:[%s1044_s1 + $0x168] sm:$0xff]  ;;  %s574_s18 = sshll.u32 %s1050_s16, 5  ;;  %s571_s17 = sshll.u32 %s1050_s16, 3 }
   0xd   : > { %304 = vmatpush.msra.mxu2 %v247_v1  ;;  %v231_v3 = vld [vmem:[%s1044_s1 + $0xf8] sm:$0xff]  ;;  %v230_v7 = vld [vmem:[%s1044_s1 + $0xf0] sm:$0xff]  ;;  %v229_v10 = vld [vmem:[%s1044_s1 + $0xe8] sm:$0xff]  ;;  %s949_s7 = scalar_lea.vmem %s1043_s0, %s574_s18  ;;  %s195_s19 = scalar_lea.vmem %s1047_s4, %s571_s17 }
   0xe   : > { %v263_v5 = vld [vmem:[%s1044_s1 + $0x1f8] sm:$0xff]  ;;  %284 = vmatpush.msra.mxu1 %v231_v3  ;;  %265 = vmatpush.msra.mxu0 %v214_v2  ;;  %v262_v9 = vld [vmem:[%s1044_s1 + $0x1f0] sm:$0xff]  ;;  %v212_v11 = vld [vmem:[%s1044_s1 + $0x60] sm:$0xff] }
   0xf   : > { %324 = vmatpush.msra.mxu3 %v263_v5  ;;  %305 = vmatpush.msra.mxu2 %v246_v4  ;;  %v244_v12 = vld [vmem:[%s1044_s1 + $0x160] sm:$0xff]  ;;  %v261_v13 = vld [vmem:[%s1044_s1 + $0x1e8] sm:$0xff]  ;;  %v211_v16 = vld [vmem:[%s1044_s1 + $0x58] sm:$0xff] }
  0x10   : > { %285 = vmatpush.msra.mxu1 %v230_v7  ;;  %266 = vmatpush.msra.mxu0 %v213_v6  ;;  %v228_v14 = vld [vmem:[%s1044_s1 + $0xe0] sm:$0xff]  ;;  %v243_v17 = vld [vmem:[%s1044_s1 + $0x158] sm:$0xff]  ;;  %v210_v20 = vld [vmem:[%s1044_s1 + $0x50] sm:$0xff] }
  0x11   : > { %325 = vmatpush.msra.mxu3 %v262_v9  ;;  %306 = vmatpush.msra.mxu2 %v245_v8  ;;  %v260_v15 = vld [vmem:[%s1044_s1 + $0x1e0] sm:$0xff]  ;;  %v227_v18 = vld [vmem:[%s1044_s1 + $0xd8] sm:$0xff]  ;;  %v242_v21 = vld [vmem:[%s1044_s1 + $0x150] sm:$0xff] }
  0x12   : > { %286 = vmatpush.msra.mxu1 %v229_v10  ;;  %267 = vmatpush.msra.mxu0 %v212_v11  ;;  %v259_v19 = vld [vmem:[%s1044_s1 + $0x1d8] sm:$0xff]  ;;  %v226_v22 = vld [vmem:[%s1044_s1 + $0xd0] sm:$0xff]  ;;  %v209_v24 = vld [vmem:[%s1044_s1 + $0x48] sm:$0xff] }
  0x13   : > { %326 = vmatpush.msra.mxu3 %v261_v13  ;;  %307 = vmatpush.msra.mxu2 %v244_v12  ;;  %v258_v23 = vld [vmem:[%s1044_s1 + $0x1d0] sm:$0xff]  ;;  %v241_v25 = vld [vmem:[%s1044_s1 + $0x148] sm:$0xff]  ;;  %v208_v28 = vld [vmem:[%s1044_s1 + $0x40] sm:$0xff] }
  0x14   : > { %287 = vmatpush.msra.mxu1 %v228_v14  ;;  %268 = vmatpush.msra.mxu0 %v211_v16  ;;  %v225_v26 = vld [vmem:[%s1044_s1 + $0xc8] sm:$0xff]  ;;  %v240_v29 = vld [vmem:[%s1044_s1 + $0x140] sm:$0xff]  ;;  %v207_v32 = vld [vmem:[%s1044_s1 + $0x38] sm:$0xff] }
  0x15   : > { %327 = vmatpush.msra.mxu3 %v260_v15  ;;  %308 = vmatpush.msra.mxu2 %v243_v17  ;;  %v257_v27 = vld [vmem:[%s1044_s1 + $0x1c8] sm:$0xff]  ;;  %v224_v30 = vld [vmem:[%s1044_s1 + $0xc0] sm:$0xff]  ;;  %v239_v33 = vld [vmem:[%s1044_s1 + $0x138] sm:$0xff] }
  0x16   : > { %288 = vmatpush.msra.mxu1 %v227_v18  ;;  %269 = vmatpush.msra.mxu0 %v210_v20  ;;  %v256_v31 = vld [vmem:[%s1044_s1 + $0x1c0] sm:$0xff]  ;;  %v223_v34 = vld [vmem:[%s1044_s1 + $0xb8] sm:$0xff]  ;;  %v206_v36 = vld [vmem:[%s1044_s1 + $0x30] sm:$0xff] }
  0x17   : > { %328 = vmatpush.msra.mxu3 %v259_v19  ;;  %309 = vmatpush.msra.mxu2 %v242_v21  ;;  %v255_v35 = vld [vmem:[%s1044_s1 + $0x1b8] sm:$0xff]  ;;  %v238_v37 = vld [vmem:[%s1044_s1 + $0x130] sm:$0xff]  ;;  %v205_v40 = vld [vmem:[%s1044_s1 + $0x28] sm:$0xff] }
  0x18   : > { %289 = vmatpush.msra.mxu1 %v226_v22  ;;  %270 = vmatpush.msra.mxu0 %v209_v24  ;;  %v222_v38 = vld [vmem:[%s1044_s1 + $0xb0] sm:$0xff]  ;;  %v237_v41 = vld [vmem:[%s1044_s1 + $0x128] sm:$0xff]  ;;  %v204_v44 = vld [vmem:[%s1044_s1 + $0x20] sm:$0xff] }
  0x19   : > { %329 = vmatpush.msra.mxu3 %v258_v23  ;;  %310 = vmatpush.msra.mxu2 %v241_v25  ;;  %v254_v39 = vld [vmem:[%s1044_s1 + $0x1b0] sm:$0xff]  ;;  %v221_v42 = vld [vmem:[%s1044_s1 + $0xa8] sm:$0xff]  ;;  %v236_v45 = vld [vmem:[%s1044_s1 + $0x120] sm:$0xff] }
  0x1a   : > { %290 = vmatpush.msra.mxu1 %v225_v26  ;;  %271 = vmatpush.msra.mxu0 %v208_v28  ;;  %v253_v43 = vld [vmem:[%s1044_s1 + $0x1a8] sm:$0xff]  ;;  %v220_v46 = vld [vmem:[%s1044_s1 + $0xa0] sm:$0xff]  ;;  %v203_v48 = vld [vmem:[%s1044_s1 + $0x18] sm:$0xff] }
  0x1b   : > { %330 = vmatpush.msra.mxu3 %v257_v27  ;;  %311 = vmatpush.msra.mxu2 %v240_v29  ;;  %v252_v47 = vld [vmem:[%s1044_s1 + $0x1a0] sm:$0xff]  ;;  %v235_v49 = vld [vmem:[%s1044_s1 + $0x118] sm:$0xff]  ;;  %v202_v52 = vld [vmem:[%s1044_s1 + $0x10] sm:$0xff] }
  0x1c   : > { %291 = vmatpush.msra.mxu1 %v224_v30  ;;  %272 = vmatpush.msra.mxu0 %v207_v32  ;;  %v219_v50 = vld [vmem:[%s1044_s1 + $0x98] sm:$0xff]  ;;  %v234_v53 = vld [vmem:[%s1044_s1 + $0x110] sm:$0xff]  ;;  %v201_v56 = vld [vmem:[%s1044_s1 + $0x8] sm:$0xff] }
  0x1d   : > { %331 = vmatpush.msra.mxu3 %v256_v31  ;;  %312 = vmatpush.msra.mxu2 %v239_v33  ;;  %v251_v51 = vld [vmem:[%s1044_s1 + $0x198] sm:$0xff]  ;;  %v218_v54 = vld [vmem:[%s1044_s1 + $0x90] sm:$0xff]  ;;  %v233_v57 = vld [vmem:[%s1044_s1 + $0x108] sm:$0xff] }
  0x1e   : > { %292 = vmatpush.msra.mxu1 %v223_v34  ;;  %273 = vmatpush.msra.mxu0 %v206_v36  ;;  %v250_v55 = vld [vmem:[%s1044_s1 + $0x190] sm:$0xff]  ;;  %v217_v58 = vld [vmem:[%s1044_s1 + $0x88] sm:$0xff]  ;;  %v200_v60 = vld [vmem:[%s1044_s1] sm:$0xff] }
  0x1f   : > { %332 = vmatpush.msra.mxu3 %v255_v35  ;;  %313 = vmatpush.msra.mxu2 %v238_v37  ;;  %v249_v59 = vld [vmem:[%s1044_s1 + $0x188] sm:$0xff]  ;;  %v232_v61 = vld [vmem:[%s1044_s1 + $0x100] sm:$0xff]  ;;  %v363_v62 = vld [vmem:[%s1045_s2 + $0x78] sm:$0xff] }
  0x20   : > { %293 = vmatpush.msra.mxu1 %v222_v38  ;;  %274 = vmatpush.msra.mxu0 %v205_v40  ;;  %v395_v63 = vld [vmem:[%s1045_s2 + $0x178] sm:$0xff]  ;;  %v216_v0 = vld [vmem:[%s1044_s1 + $0x80] sm:$0xff]  ;;  %v362_v2 = vld [vmem:[%s1045_s2 + $0x70] sm:$0xff] }
  0x21   : > { %333 = vmatpush.msra.mxu3 %v254_v39  ;;  %314 = vmatpush.msra.mxu2 %v237_v41  ;;  %v248_v1 = vld [vmem:[%s1044_s1 + $0x180] sm:$0xff]  ;;  %v379_v3 = vld [vmem:[%s1045_s2 + $0xf8] sm:$0xff]  ;;  %v394_v4 = vld [vmem:[%s1045_s2 + $0x170] sm:$0xff] }
  0x22   : > { %294 = vmatpush.msra.mxu1 %v221_v42  ;;  %275 = vmatpush.msra.mxu0 %v204_v44  ;;  %v411_v5 = vld [vmem:[%s1045_s2 + $0x1f8] sm:$0xff]  ;;  %v361_v6 = vld [vmem:[%s1045_s2 + $0x68] sm:$0xff]  ;;  %v378_v7 = vld [vmem:[%s1045_s2 + $0xf0] sm:$0xff] }
  0x23   : > { %334 = vmatpush.msra.mxu3 %v253_v43  ;;  %315 = vmatpush.msra.mxu2 %v236_v45  ;;  %v393_v8 = vld [vmem:[%s1045_s2 + $0x168] sm:$0xff]  ;;  %v410_v9 = vld [vmem:[%s1045_s2 + $0x1f0] sm:$0xff]  ;;  %v360_v10 = vld [vmem:[%s1045_s2 + $0x60] sm:$0xff] }
  0x24   : > { %295 = vmatpush.msra.mxu1 %v220_v46  ;;  %276 = vmatpush.msra.mxu0 %v203_v48  ;;  %v377_v11 = vld [vmem:[%s1045_s2 + $0xe8] sm:$0xff]  ;;  %v392_v12 = vld [vmem:[%s1045_s2 + $0x160] sm:$0xff]  ;;  %v359_v14 = vld [vmem:[%s1045_s2 + $0x58] sm:$0xff] }
  0x25   : > { %335 = vmatpush.msra.mxu3 %v252_v47  ;;  %316 = vmatpush.msra.mxu2 %v235_v49  ;;  %v409_v13 = vld [vmem:[%s1045_s2 + $0x1e8] sm:$0xff]  ;;  %v376_v15 = vld [vmem:[%s1045_s2 + $0xe0] sm:$0xff]  ;;  %v391_v16 = vld [vmem:[%s1045_s2 + $0x158] sm:$0xff] }
  0x26   : > { %296 = vmatpush.msra.mxu1 %v219_v50  ;;  %277 = vmatpush.msra.mxu0 %v202_v52  ;;  %v408_v17 = vld [vmem:[%s1045_s2 + $0x1e0] sm:$0xff]  ;;  %v358_v18 = vld [vmem:[%s1045_s2 + $0x50] sm:$0xff]  ;;  %v375_v19 = vld [vmem:[%s1045_s2 + $0xd8] sm:$0xff] }
  0x27   : > { %336 = vmatpush.msra.mxu3 %v251_v51  ;;  %317 = vmatpush.msra.mxu2 %v234_v53  ;;  %v390_v20 = vld [vmem:[%s1045_s2 + $0x150] sm:$0xff]  ;;  %v407_v21 = vld [vmem:[%s1045_s2 + $0x1d8] sm:$0xff]  ;;  %v357_v22 = vld [vmem:[%s1045_s2 + $0x48] sm:$0xff] }
  0x28   : > { %297 = vmatpush.msra.mxu1 %v218_v54  ;;  %278 = vmatpush.msra.mxu0 %v201_v56  ;;  %v374_v23 = vld [vmem:[%s1045_s2 + $0xd0] sm:$0xff]  ;;  %v389_v24 = vld [vmem:[%s1045_s2 + $0x148] sm:$0xff]  ;;  %v356_v26 = vld [vmem:[%s1045_s2 + $0x40] sm:$0xff] }
  0x29   : > { %337 = vmatpush.msra.mxu3 %v250_v55  ;;  %318 = vmatpush.msra.mxu2 %v233_v57  ;;  %v406_v25 = vld [vmem:[%s1045_s2 + $0x1d0] sm:$0xff]  ;;  %v373_v27 = vld [vmem:[%s1045_s2 + $0xc8] sm:$0xff]  ;;  %v388_v28 = vld [vmem:[%s1045_s2 + $0x140] sm:$0xff] }
  0x2a   : > { %298 = vmatpush.msra.mxu1 %v217_v58  ;;  %279 = vmatpush.msra.mxu0 %v200_v60  ;;  %v405_v29 = vld [vmem:[%s1045_s2 + $0x1c8] sm:$0xff]  ;;  %v355_v30 = vld [vmem:[%s1045_s2 + $0x38] sm:$0xff]  ;;  %v372_v31 = vld [vmem:[%s1045_s2 + $0xc0] sm:$0xff] }
  0x2b   : > { %338 = vmatpush.msra.mxu3 %v249_v59  ;;  %319 = vmatpush.msra.mxu2 %v232_v61  ;;  %v387_v32 = vld [vmem:[%s1045_s2 + $0x138] sm:$0xff]  ;;  %v404_v33 = vld [vmem:[%s1045_s2 + $0x1c0] sm:$0xff]  ;;  %v354_v34 = vld [vmem:[%s1045_s2 + $0x30] sm:$0xff] }
  0x2c   : > { %412 = vmatpush.msrb.mxu0 %v363_v62  ;;  %299 = vmatpush.msra.mxu1 %v216_v0  ;;  %v371_v35 = vld [vmem:[%s1045_s2 + $0xb8] sm:$0xff]  ;;  %v386_v36 = vld [vmem:[%s1045_s2 + $0x130] sm:$0xff]  ;;  %v353_v38 = vld [vmem:[%s1045_s2 + $0x28] sm:$0xff] }
  0x2d   : > { %452 = vmatpush.msrb.mxu2 %v395_v63  ;;  %339 = vmatpush.msra.mxu3 %v248_v1  ;;  %v403_v37 = vld [vmem:[%s1045_s2 + $0x1b8] sm:$0xff]  ;;  %v370_v39 = vld [vmem:[%s1045_s2 + $0xb0] sm:$0xff]  ;;  %v385_v40 = vld [vmem:[%s1045_s2 + $0x128] sm:$0xff] }
  0x2e   : > { %413 = vmatpush.msrb.mxu0 %v362_v2  ;;  %432 = vmatpush.msrb.mxu1 %v379_v3  ;;  %v402_v41 = vld [vmem:[%s1045_s2 + $0x1b0] sm:$0xff]  ;;  %v352_v43 = vld [vmem:[%s1045_s2 + $0x20] sm:$0xff]  ;;  %v369_v44 = vld [vmem:[%s1045_s2 + $0xa8] sm:$0xff] }
  0x2f   : > { %453 = vmatpush.msrb.mxu2 %v394_v4  ;;  %472 = vmatpush.msrb.mxu3 %v411_v5  ;;  %v198_v42 = vld [vmem:[%s949_s7 + $0x10] sm:$0xff]  ;;  %v384_v45 = vld [vmem:[%s1045_s2 + $0x120] sm:$0xff]  ;;  %v401_v46 = vld [vmem:[%s1045_s2 + $0x1a8] sm:$0xff] }
  0x30   : > { %414 = vmatpush.msrb.mxu0 %v361_v6  ;;  %433 = vmatpush.msrb.mxu1 %v378_v7  ;;  %v196_v47 = vld [vmem:[%s949_s7] sm:$0xff]  ;;  %v199_v48 = vld [vmem:[%s949_s7 + $0x18] sm:$0xff]  ;;  %v197_v53 = vld [vmem:[%s949_s7 + $0x8] sm:$0xff]  ;;  %v346_v0 = vmul.f32 %v198_v42, %v198_v42 }
  0x31   : > { %454 = vmatpush.msrb.mxu2 %v393_v8  ;;  %473 = vmatpush.msrb.mxu3 %v410_v9  ;;  %v351_v49 = vld [vmem:[%s1045_s2 + $0x18] sm:$0xff]  ;;  %v368_v50 = vld [vmem:[%s1045_s2 + $0xa0] sm:$0xff]  ;;  %v350_v54 = vld [vmem:[%s1045_s2 + $0x10] sm:$0xff]  ;;  %v344_v1 = vmul.f32 %v196_v47, %v196_v47  ;;  %v347_v4 = vmul.f32 %v199_v48, %v199_v48  ;;  %v345_v5 = vmul.f32 %v197_v53, %v197_v53 }
  0x32   : > { %415 = vmatpush.msrb.mxu0 %v360_v10  ;;  %434 = vmatpush.msrb.mxu1 %v377_v11  ;;  %v383_v51 = vld [vmem:[%s1045_s2 + $0x118] sm:$0xff]  ;;  %v400_v52 = vld [vmem:[%s1045_s2 + $0x1a0] sm:$0xff]  ;;  %v382_v56 = vld [vmem:[%s1045_s2 + $0x110] sm:$0xff] }
  0x33   : > { %455 = vmatpush.msrb.mxu2 %v392_v12  ;;  %474 = vmatpush.msrb.mxu3 %v409_v13  ;;  %v367_v55 = vld [vmem:[%s1045_s2 + $0x98] sm:$0xff]  ;;  %v349_v58 = vld [vmem:[%s1045_s2 + $0x8] sm:$0xff]  ;;  %v366_v59 = vld [vmem:[%s1045_s2 + $0x90] sm:$0xff] }
  0x34   : > { %416 = vmatpush.msrb.mxu0 %v359_v14  ;;  %435 = vmatpush.msrb.mxu1 %v376_v15  ;;  %v399_v57 = vld [vmem:[%s1045_s2 + $0x198] sm:$0xff]  ;;  %v381_v60 = vld [vmem:[%s1045_s2 + $0x108] sm:$0xff]  ;;  %v398_v61 = vld [vmem:[%s1045_s2 + $0x190] sm:$0xff] }
  0x35   : > { %456 = vmatpush.msrb.mxu2 %v391_v16  ;;  %475 = vmatpush.msrb.mxu3 %v408_v17  ;;  %v348_v62 = vld [vmem:[%s1045_s2] sm:$0xff]  ;;  %v365_v63 = vld [vmem:[%s1045_s2 + $0x88] sm:$0xff] }
  0x36   : > { %417 = vmatpush.msrb.mxu0 %v358_v18  ;;  %436 = vmatpush.msrb.mxu1 %v375_v19  ;;  %v380_v2 = vld [vmem:[%s1045_s2 + $0x100] sm:$0xff]  ;;  %v397_v3 = vld [vmem:[%s1045_s2 + $0x188] sm:$0xff] }
  0x37   : > { %457 = vmatpush.msrb.mxu2 %v390_v20  ;;  %476 = vmatpush.msrb.mxu3 %v407_v21  ;;  %v364_v6 = vld [vmem:[%s1045_s2 + $0x80] sm:$0xff] }
  0x38   : > { %418 = vmatpush.msrb.mxu0 %v357_v22  ;;  %437 = vmatpush.msrb.mxu1 %v374_v23  ;;  %v396_v7 = vld [vmem:[%s1045_s2 + $0x180] sm:$0xff] }
  0x39   : > { %458 = vmatpush.msrb.mxu2 %v389_v24  ;;  %477 = vmatpush.msrb.mxu3 %v406_v25  ;;  %v583_v21 = vld [vmem:[%s1046_s3] ss:$0 sm:$0xff] }
  0x3a   : > { %419 = vmatpush.msrb.mxu0 %v356_v26  ;;  %438 = vmatpush.msrb.mxu1 %v373_v27 }
  0x3b   : > { %459 = vmatpush.msrb.mxu2 %v388_v28  ;;  %478 = vmatpush.msrb.mxu3 %v405_v29 }
  0x3c   : > { %420 = vmatpush.msrb.mxu0 %v355_v30  ;;  %439 = vmatpush.msrb.mxu1 %v372_v31 }
  0x3d   : > { %460 = vmatpush.msrb.mxu2 %v387_v32  ;;  %479 = vmatpush.msrb.mxu3 %v404_v33 }
  0x3e   : > { %421 = vmatpush.msrb.mxu0 %v354_v34  ;;  %440 = vmatpush.msrb.mxu1 %v371_v35 }
  0x3f   : > { %461 = vmatpush.msrb.mxu2 %v386_v36  ;;  %480 = vmatpush.msrb.mxu3 %v403_v37 }
  0x40   : > { %422 = vmatpush.msrb.mxu0 %v353_v38  ;;  %441 = vmatpush.msrb.mxu1 %v370_v39 }
  0x41   : > { %462 = vmatpush.msrb.mxu2 %v385_v40  ;;  %481 = vmatpush.msrb.mxu3 %v402_v41 }
  0x42   : > { %320 = vmatmul.f32.vlgmr.msra.gmra.mxu2 %v198_v42  ;;  %423 = vmatpush.msrb.mxu0 %v352_v43 }
  0x43   : > { %442 = vmatpush.msrb.mxu1 %v369_v44  ;;  %463 = vmatpush.msrb.mxu2 %v384_v45 }
  0x44   : > { %482 = vmatpush.msrb.mxu3 %v401_v46  ;;  %280 = vmatmul.f32.vlgmr.msra.gmra.mxu0 %v196_v47 }
  0x45   : > { %340 = vmatmul.f32.vlgmr.msra.gmra.mxu3 %v199_v48  ;;  %424 = vmatpush.msrb.mxu0 %v351_v49 }
  0x46   : > { %443 = vmatpush.msrb.mxu1 %v368_v50  ;;  %464 = vmatpush.msrb.mxu2 %v383_v51 }
  0x47   : > { %483 = vmatpush.msrb.mxu3 %v400_v52  ;;  %300 = vmatmul.f32.vlgmr.msra.gmra.mxu1 %v197_v53 }
  0x48   : > { %425 = vmatpush.msrb.mxu0 %v350_v54  ;;  %444 = vmatpush.msrb.mxu1 %v367_v55 }
  0x49   : > { %465 = vmatpush.msrb.mxu2 %v382_v56  ;;  %484 = vmatpush.msrb.mxu3 %v399_v57 }
  0x4a   : > { %426 = vmatpush.msrb.mxu0 %v349_v58  ;;  %445 = vmatpush.msrb.mxu1 %v366_v59 }
  0x4b   : > { %466 = vmatpush.msrb.mxu2 %v381_v60  ;;  %485 = vmatpush.msrb.mxu3 %v398_v61 }
  0x4c   : > { %427 = vmatpush.msrb.mxu0 %v348_v62  ;;  %446 = vmatpush.msrb.mxu1 %v365_v63 }
  0x4d   : > { %467 = vmatpush.msrb.mxu2 %v380_v2  ;;  %486 = vmatpush.msrb.mxu3 %v397_v3 }
  0x4e   : > { %428 = vmatmul.f32.vlgmr.msrb.gmra.mxu0 %v344_v1  ;;  %468 = vmatmul.f32.vlgmr.msrb.gmra.mxu2 %v346_v0 }
  0x4f   : > { %447 = vmatpush.msrb.mxu1 %v364_v6  ;;  %487 = vmatpush.msrb.mxu3 %v396_v7 }
  0x50   : > { %448 = vmatmul.f32.vlgmr.msrb.gmra.mxu1 %v345_v5  ;;  %488 = vmatmul.f32.vlgmr.msrb.gmra.mxu3 %v347_v4 }
  0xc1   : > { %v281_v8 = vpop.f32.mrf.mxu0 }
  0xc4   : > { %v301_v9 = vpop.f32.mrf.mxu1 }
  0xc5   : > { %v302_v10 = vadd.f32 %v301_v9, %v281_v8  ;;  %v321_v11 = vpop.f32.mrf.mxu2 }
  0xc7   : > { %v322_v12 = vadd.f32 %v321_v11, %v302_v10 }
  0xc8   : > { %v341_v13 = vpop.f32.mrf.mxu3 }
  0xc9   : > { %v342_v14 = vadd.f32 %v341_v13, %v322_v12 }
  0xcb   : > { %v429_v15 = vpop.f32.mrf.mxu0 }
  0xcc   : > { %v430_v16 = vadd.f32 %v429_v15, %v342_v14 }
  0xcd   : > { %v449_v17 = vpop.f32.mrf.mxu1 }
  0xce   : > { %v450_v18 = vadd.f32 %v449_v17, %v430_v16 }
  0xd1   : > { %v469_v19 = vpop.f32.mrf.mxu2 }
  0xd2   : > { %v470_v20 = vadd.f32 %v469_v19, %v450_v18 }
  0xd3   : > { %v489_v22 = vpop.f32.mrf.mxu3 }
  0xd4   : > { %v490_v23 = vadd.f32 %v489_v22, %v470_v20 }
  0xd6   : > { %v496_v24 = vadd.f32 %v583_v21, %v490_v23 }
  0xd8   : > { %v497_v25 = vmax.f32 %v496_v24, 0.0 }
  0xda   : > { %584 = vrsqrt.f32 %v497_v25  ;;  %vm505_vm0 = vcmp.eq.f32.partialorder %v497_v25, inf  ;;  %v508_v33 = vand.u32 2147483648, %v497_v25  ;;  %vm507_vm1 = vcmp.eq.f32.partialorder %v497_v25, 0.0 }
  0xe0   : > { %v585_v26 = vpop.eup %584 }
  0xe1   : > { %v499_v27 = vmul.f32 %v585_v26, %v497_v25 }
  0xe3   : > { %v500_v28 = vmul.f32 %v585_v26, %v499_v27 }
  0xe5   : > { %v501_v29 = vmul.f32 0.5, %v500_v28 }
  0xe7   : > { %v502_v30 = vsub.f32 1.5, %v501_v29 }
  0xe9   : > { %v503_v31 = vmul.f32 %v585_v26, %v502_v30 }
  0xeb   : > { %v504_v32 = vmul.f32 %v503_v31, %v497_v25 }
  0xed   : > { %v506_v34 = vsel %vm505_vm0, %v497_v25, %v504_v32 }
  0xee   : > { %v509_v35 = vsel %vm507_vm1, %v508_v33, %v506_v34 }
  0xef   : > { %510 = vst [vmem:[%s195_s19] sm:$0xff] %v509_v35 }
  0xf0 PF: > { %s14_s15 = sadd.s32 1, %s592_s15  }
  0xf1   : > { %p11_p4 = scmp.ge.s32.totalorder %s14_s15, 4  }
  0xf3   :  { %13 = sbr.rel (!%p11_p4) target bundleno = 1 (0x1), region = 66 }

</bundles_post_ra>
